<compile_context>
chip_gen: v7x
topology: tpu7x:2x2x1
jax: 0.10.0
libtpu: 0.0.40
codegen_flags: <defaults>
</compile_context>

<pallas_src>
import functools

import jax
import jax.numpy as jnp
from jax.experimental import pallas as pl
from jax.experimental.pallas import tpu as pltpu


def _round_up(x, m):
    return (x + m - 1) // m * m


def _vmem_capacity_bytes():
    """Generation-aware per-TensorCore VMEM capacity, with a safe fallback."""
    try:
        cap = int(pltpu.get_tpu_info().vmem_capacity_bytes)
        if cap > 0:
            return cap
    except Exception:
        pass
    return 64 << 20  # v7x per-TC size: conservative lower bound for all gens


def _choose_tiling(B, N, D, dtype):
    """Pick (block_b, block_n, D_pad, vmem_limit) for the memory-bound sum.

    Preferred layout: full (N, D) plane per batch row (one contiguous DMA per
    row) with the largest block_b that fits the budget while keeping >= 2
    parallel grid steps over batch (megacore on v7x).  If even a sublane-group
    of full-N rows overflows the budget, also grid over N ('arbitrary') with
    an f32 accumulator.
    """
    itemsize = jnp.dtype(dtype).itemsize
    sub = max(8, 32 // itemsize)      # dtype-native sublane multiple
    D_pad = _round_up(D, 128)         # lane-dense output width

    capacity = _vmem_capacity_bytes()
    # 48 MiB scoped limit on v7x (64 MiB physical), 64 MiB on v5e/v6e (128 MiB).
    vmem_limit = min((capacity * 3) // 4, 64 << 20)
    # Tiles + accumulator budget; leave headroom for Mosaic internals.
    budget = (vmem_limit * 3) // 4

    def tile_bytes(block_b, block_n):
        pad_n = _round_up(block_n, sub)
        in_dma = 2 * block_b * pad_n * D_pad * itemsize       # double-buffered input
        widen = block_b * pad_n * D_pad * max(itemsize, 4)    # f32-widened compute copy
        outs = block_b * D_pad * (4 + 2 * itemsize)           # f32 acc + 2x output buf
        return in_dma + widen + outs

    per_row = tile_bytes(1, N)                # everything scales linearly in block_b
    bb_cap = int(budget // per_row)           # full-N rows that fit the budget

    if bb_cap >= min(B, sub):
        # Full-N blocks: as big as the budget allows, >= 2 parallel steps when B > sub.
        if B <= sub:
            block_b = B
        else:
            target = _round_up(-(-B // 2), sub)           # ceil(B/2) -> 2 grid steps
            block_b = max(sub, min(target, (bb_cap // sub) * sub))
        return block_b, N, D_pad, vmem_limit

    # Fallback: a single (N, D) plane is too large -> also grid over N.
    block_b = min(B, sub)
    fixed = block_b * D_pad * (4 + 2 * itemsize)
    per_n = block_b * D_pad * (2 * itemsize + max(itemsize, 4))
    bn_cap = int((budget - fixed) // per_n) if budget > fixed else 0
    block_n = max(sub, (bn_cap // sub) * sub)
    block_n = min(block_n, _round_up(N, sub))
    # TODO(synk): for extreme D where even a (sub, sub, D) strip overflows VMEM,
    # a third grid axis over D would be needed.
    return block_b, block_n, D_pad, vmem_limit


def _sum_kernel(ft_ref, o_ref, acc_ref, *, N, block_n, D, D_pad):
    # ft_ref: (block_b, block_n, D) VMEM tile; o_ref: (block_b, D_pad);
    # acc_ref: (block_b, D_pad) f32 scratch accumulator across the N grid axis.
    k = pl.program_id(1)

    @pl.when(k == 0)
    def _init():
        acc_ref[...] = jnp.zeros_like(acc_ref)

    x = ft_ref[...].astype(jnp.float32)
    if N % block_n != 0:
        # Trailing N block is padded with garbage: zero out-of-range neighbors.
        n_idx = jax.lax.broadcasted_iota(jnp.int32, x.shape, 1)
        x = jnp.where(n_idx < (N - k * block_n), x, 0.0)
    s = jnp.sum(x, axis=1)                      # (block_b, D) f32
    if D_pad != D:
        # Keep the output tile lane-dense (full 128-lane unmasked stores).
        s = jnp.concatenate(
            [s, jnp.zeros((s.shape[0], D_pad - D), jnp.float32)], axis=-1)
    acc_ref[...] += s

    @pl.when(k == pl.num_programs(1) - 1)
    def _finalize():
        o_ref[...] = acc_ref[...].astype(o_ref.dtype)


def sum_aggregator(neighbor):
    """neighbor: (B, N, D) -> (B, D), summing over the neighbor axis (dim=1)."""
    B, N, D = neighbor.shape
    dtype = neighbor.dtype
    itemsize = jnp.dtype(dtype).itemsize
    block_b, block_n, D_pad, vmem_limit = _choose_tiling(B, N, D, dtype)

    grid = (pl.cdiv(B, block_b), pl.cdiv(N, block_n))
    kernel = functools.partial(_sum_kernel, N=N, block_n=block_n, D=D, D_pad=D_pad)

    cost = pl.CostEstimate(
        flops=B * max(N - 1, 0) * D,
        transcendentals=0,
        bytes_accessed=neighbor.size * itemsize + B * D_pad * itemsize,
    )

    out = pl.pallas_call(
        kernel,
        out_shape=jax.ShapeDtypeStruct((B, D_pad), dtype),
        grid=grid,
        in_specs=[
            # Last two block dims (block_n, D): block_n is a sublane multiple
            # or the full N, D is the full array dim -> always tiling-legal,
            # and each batch row's DMA stays large and contiguous.
            pl.BlockSpec((block_b, block_n, D), lambda i, k: (i, k, 0)),
        ],
        out_specs=pl.BlockSpec((block_b, D_pad), lambda i, k: (i, 0)),
        scratch_shapes=[pltpu.VMEM((block_b, D_pad), jnp.float32)],
        compiler_params=pltpu.CompilerParams(
            dimension_semantics=("parallel", "arbitrary"),
            vmem_limit_bytes=vmem_limit,
        ),
        cost_estimate=cost,
    )(neighbor)

    if D_pad != D:
        out = out[:, :D]
    return out


def sum_aggregator_ref(neighbor):
    return jnp.sum(neighbor, axis=1)


if __name__ == "__main__":
    key = jax.random.PRNGKey(0)
    # Lane-dense demo: D = 128 fills every vreg's 128 lanes; B = 64 gives a
    # 2-step parallel batch grid (block_b = 32) with full-N blocks.
    B, N, D = 64, 8, 128
    neighbor = jax.random.normal(key, (B, N, D), dtype=jnp.float32)

    out = jax.block_until_ready(sum_aggregator(neighbor))
    ref = sum_aggregator_ref(neighbor)

    assert out.shape == (B, D)
    assert jnp.allclose(out, ref, atol=1e-5, rtol=1e-5), "mismatch vs reference"
    print("KERNEL_OK")
</pallas_src>

<mosaic_0001>
module attributes {stable_mosaic.version = 11 : i64} {
  func.func @_sum_kernel(%arg0: i32, %arg1: i32, %arg2: memref<32x8x128xf32, #tpu.memory_space<vmem>>, %arg3: memref<32x128xf32, #tpu.memory_space<vmem>>, %arg4: memref<32x128xf32, #tpu.memory_space<vmem>>) attributes {dimension_semantics = [#tpu.dimension_semantics<parallel>, #tpu.dimension_semantics<arbitrary>], iteration_bounds = array<i64: 2, 1>, scalar_prefetch = 0 : i64, scratch_operands = 1 : i64, tpu.core_type = #tpu.core_type<tc>, window_params = [{transform_indices = @transform_0, window_bounds = array<i64: 32, 8, 128>}, {transform_indices = @transform_1, window_bounds = array<i64: 32, 128>}]} {
    %c0_i32 = arith.constant 0 : i32
    %0 = arith.cmpi eq, %arg1, %c0_i32 : i32
    %1 = arith.extui %0 : i1 to i32
    %c0_i32_0 = arith.constant 0 : i32
    %2 = arith.cmpi ne, %1, %c0_i32_0 : i32
    scf.if %2 {
      %cst_9 = arith.constant 0.000000e+00 : f32
      %11 = vector.broadcast %cst_9 : f32 to vector<32x128xf32>
      %c0_10 = arith.constant 0 : index
      %c0_11 = arith.constant 0 : index
      %12 = vector.load %arg4[%c0_10, %c0_11] : memref<32x128xf32, #tpu.memory_space<vmem>>, vector<32x128xf32>
      tpu.vector_store %arg4[%c0_10, %c0_11], %11 {strides = array<i32>} : memref<32x128xf32, #tpu.memory_space<vmem>>, vector<32x128xf32>,
    } else {
    }
    %c0 = arith.constant 0 : index
    %c0_1 = arith.constant 0 : index
    %c0_2 = arith.constant 0 : index
    %3 = vector.load %arg2[%c0, %c0_1, %c0_2] : memref<32x8x128xf32, #tpu.memory_space<vmem>>, vector<32x8x128xf32>
    %cst = arith.constant dense<0.000000e+00> : vector<32x128xf32>
    %4 = vector.multi_reduction <add>, %3, %cst [1] : vector<32x8x128xf32> to vector<32x128xf32>
    %c0_3 = arith.constant 0 : index
    %c0_4 = arith.constant 0 : index
    %5 = vector.load %arg4[%c0_3, %c0_4] : memref<32x128xf32, #tpu.memory_space<vmem>>, vector<32x128xf32>
    %6 = arith.addf %5, %4 : vector<32x128xf32>
    %c0_5 = arith.constant 0 : index
    %c0_6 = arith.constant 0 : index
    %7 = vector.load %arg4[%c0_5, %c0_6] : memref<32x128xf32, #tpu.memory_space<vmem>>, vector<32x128xf32>
    tpu.vector_store %arg4[%c0_5, %c0_6], %6 {strides = array<i32>} : memref<32x128xf32, #tpu.memory_space<vmem>>, vector<32x128xf32>,
    %c0_i32_7 = arith.constant 0 : i32
    %8 = arith.cmpi eq, %arg1, %c0_i32_7 : i32
    %9 = arith.extui %8 : i1 to i32
    %c0_i32_8 = arith.constant 0 : i32
    %10 = arith.cmpi ne, %9, %c0_i32_8 : i32
    scf.if %10 {
      %c0_9 = arith.constant 0 : index
      %c0_10 = arith.constant 0 : index
      %11 = vector.load %arg4[%c0_9, %c0_10] : memref<32x128xf32, #tpu.memory_space<vmem>>, vector<32x128xf32>
      %c0_11 = arith.constant 0 : index
      %c0_12 = arith.constant 0 : index
      %12 = vector.load %arg3[%c0_11, %c0_12] : memref<32x128xf32, #tpu.memory_space<vmem>>, vector<32x128xf32>
      tpu.vector_store %arg3[%c0_11, %c0_12], %11 {strides = array<i32>} : memref<32x128xf32, #tpu.memory_space<vmem>>, vector<32x128xf32>,
    } else {
    }
    return
  }
  func.func @transform_0(%arg0: i32, %arg1: i32) -> (i32, i32, i32) {
    %c0_i32 = arith.constant 0 : i32
    %c0_i32_0 = arith.constant 0 : i32
    return %arg0, %arg1, %c0_i32 : i32, i32, i32
  }
  func.func @transform_1(%arg0: i32, %arg1: i32) -> (i32, i32) {
    %c0_i32 = arith.constant 0 : i32
    %c0_i32_0 = arith.constant 0 : i32
    return %arg0, %c0_i32 : i32, i32
  }
}

</mosaic_0001>

<bundles_post_ra>
// kernel: tpu_custom_call.1
= control target key start
LH: loop header
LB: loop body
LE: loop exit
PB: predicated region body
PF: predicated region fallthrough
CT: control target
= control target key end

     0   :  { %6 = vsyncpa [#allocation4], 0  ;;  %s1033_s0 = inlined_call_operand.hbm [shape: f32[64,8,128], index: 0, kind: input, shape index: {}]   ;;  %s1034_s1 = inlined_call_operand.hbm [shape: f32[64,128], index: 1, kind: output, shape index: {}]  }
   0x1   :  { %8 = vsyncpa [#allocation4 + $0x1], 0 }
   0x2   :  { %9 = vsyncpa [#allocation5], 0 }
   0x3   :  { %11 = vsyncpa [#allocation5 + $0x1], 0  ;;  %s788_s6 = smov 0   ;;  %s790_s7 = smov 0  }
   0x4   :  { %s792_s8 = smov 0   ;;  %s794_s9 = smov 0  }
   0x5   :  { %s796_s10 = smov 0   ;;  %s798_s11 = smov 0  }
   0x6 LB: > { %s575_s12 = sadd.s32 4294967295, %s770_s11   ;;  %s576_s13 = sadd.s32 4294967294, %s770_s11   ;;  %s770_s11 = sphi %s798_s11, %s17_s11   ;;  %s766_s10 = sphi %s796_s10, %s1049_s10   ;;  %s762_s9 = sphi %s794_s9, %s1048_s9   ;;  %s758_s8 = sphi %s792_s8, %s1047_s8   ;;  %s754_s7 = sphi %s790_s7, %s1046_s7   ;;  %s750_s6 = sphi %s788_s6, %s1045_s6  }
   0x7   : > { %s29_s14 = sadd.s32 1, %s766_s10  ;;  %s38_s15 = sadd.s32 1, %s758_s8 }
   0x8   : > { %p31_p0 = scmp.ge.s32.totalorder %s29_s14, 2  ;;  %p45_p1 = scmp.ne.s32.totalorder %s758_s8, %s754_s7 }
   0x9   : > { %p46_p2 = scmp.eq.s32.totalorder %s770_s11, 0  ;;  %p51_p3 = scmp.ne.s32.totalorder %s754_s7, %s750_s6 }
   0xa   : > { %s1051_s14 = smov (%p31_p0, %s29_s14), 0  ;;  %p52_p5 = scmp.eq.s32.totalorder %s575_s12, 0 }
   0xb   : > { %p829_p4 = por %p46_p2, %p45_p1  ;;  %s33_s17 = ssub.s32 %s766_s10, %s1051_s14 }
   0xc   : > { %p75_p6 = scmp.eq.s32.totalorder %s575_s12, 1  ;;  %p36_p7 = scmp.eq.s32.totalorder %s33_s17, 0 }
   0xd   : > { %p835_p8 = por %p52_p5, %p51_p3  ;;  %p81_p10 = scmp.eq.s32.totalorder %s576_s13, 1 }
   0xe   : > { %p839_p9 = por %p75_p6, %p45_p1  ;;  %p604_p13 = scmp.lt.s32.totalorder %s770_s11, 2 }
   0xf   : > { %s844_s20 = scalar_select %p36_p7, %s758_s8, %s38_s15  }
  0x10   : > { %s1038_s19 = scalar_select %p839_p9, 1, 0 }
  0x11   : > { %p846_p11 = por %p81_p10, %p51_p3  ;;  %s101_s22 = sand.u32 1, %s758_s8  }
  0x12   : > { %s579_s23 = sshll.u32 %s101_s22, 8  ;;  %s590_s24 = sshll.u32 %s766_s10, 12 }
  0x13   : > { %s1039_s21 = scalar_select %p846_p11, 1, 0 }
  0x14   : > { %s857_s27 = scalar_lea.hbm %s1033_s0, %s590_s24  ;;  %s105_s28 = scalar_lea.vmem [#allocation3], %s579_s23 }
  0x15   : > { %s113_s29 = sshll.u32 %s105_s28, 4  ;;  %p863_p0 = pnand %p604_p13, %p829_p4  ;;  %s859_s29 = int_to_ptr.vmem [resolvable:$true] %s113_s29 }
  0x16   : > { %s868_s2 = scalar_lea.sflag [#allocation4], %s101_s22  ;;  %s658_s3 = scalar_lea.hbm %s857_s27, 4096 }
  0x17   : > { %p659_p2 = scmp.ne.s32.totalorder %s857_s27, %s658_s3  ;;  %p660_p3 = pneg %p863_p0 }
  0x18   : > { %s663_s12 = scalar_lea.hbm %s1033_s0, 8192  ;;  %p664_p4 = scmp.lt.u32.totalorder %s857_s27, %s1033_s0 }
  0x19   : > { %p661_p5 = pnand %p660_p3, %p659_p2  ;;  %p665_p7 = scmp.lt.u32.totalorder %s663_s12, %s658_s3 }
  0x1a   : > { %p667_p13 = scmp.lt.u32.totalorder %s658_s3, %s857_s27 }
  0x1b   : > { %p662_p6 = pneg %p661_p5  ;;  %p666_p10 = por %p665_p7, %p664_p4 }
  0x1d   : > { %p668_p12 = por %p667_p13, %p666_p10 }
  0x1f   : > { %p669_p1 = pnand %p668_p12, %p662_p6 }
  0x21   : > { %672 = shalt.err (!%p669_p1)
}
  0x22   : > { %s673_s16 = scalar_lea.vmem %s859_s29, 4096  ;;  %s772_s17 = smov [#allocation3]  }
  0x23   : > { %p674_p2 = scmp.ne.s32.totalorder %s859_s29, %s673_s16  ;;  %s678_s22 = sshll.u32 %s772_s17, 4  ;;  %s679_s22 = int_to_ptr.vmem [resolvable:$false] %s678_s22 }
  0x24   : > { %s680_s23 = scalar_lea.vmem %s679_s22, 8192  ;;  %p681_p9 = scmp.lt.s32.totalorder %s859_s29, %s679_s22 }
  0x25   : > { %p676_p5 = pnand %p674_p2, %p660_p3  ;;  %p682_p4 = scmp.lt.s32.totalorder %s680_s23, %s673_s16 }
  0x27   : > { %p677_p11 = pneg %p676_p5  ;;  %p683_p7 = por %p682_p4, %p681_p9 }
  0x29   : > { %p684_p10 = pnand %p683_p7, %p677_p11 }
  0x2b   : > { %687 = shalt.err (!%p684_p10)
}
  0x2c   : > { %s773_s24 = smov 128   ;;  %s774_s25 = smov 8  }
  0x2d   : > { %599 = dma.hbm_to_vmem [thread:$0]  (!%p863_p0), %s857_s27, 4096, %s859_s29, %s868_s2, %s773_s24, %s773_s24, %s774_s25  }
  0x2e   : > { %p121_p12 = scmp.lt.s32.totalorder %s770_s11, 3  ;;  %p1041_p1 = scmp.ge.s32.totalorder %s770_s11, 1 }
  0x30   : > { %p122_p3 = pnand %p1041_p1, %p121_p12 }
  0x31   : > { %s900_s26 = sand.u32 (!%p122_p3), 1, %s754_s7  }
  0x32   : > { %125 = sbr.rel (%p122_p3) target bundleno = 136 (0x88), region = 24  ;;  %s583_s28 = sshll.u32 (!%p122_p3), %s900_s26, 8 }
  0x33   : > { %s128_s3 = scalar_lea.sflag (!%p122_p3), [#allocation4], %s900_s26  ;;  %s904_s4 = scalar_lea.vmem (!%p122_p3), [#allocation3], %s583_s28 }
  0x39   : > { %741 = dma.done.wait (%p835_p8), %s128_s3, 4096  }
  0x3a   : > { %743 = vsyncadd (%p835_p8), %s128_s3, 4294963200  ;;  %v160_v0 = vld [vmem:[%s904_s4] sm:$0xff]  ;;  %v161_v1 = vld [vmem:[%s904_s4 + $0x8] sm:$0xff]  ;;  %vm420_vm0 = vcmask 1041409   ;;  %vm422_vm1 = vcmask 1042434   ;;  %vm424_vm2 = vcmask 1043459  }
  0x3b   : > { %v162_v2 = vld [vmem:[%s904_s4 + $0x10] sm:$0xff]  ;;  %v163_v3 = vld [vmem:[%s904_s4 + $0x18] sm:$0xff]  ;;  %v164_v4 = vld [vmem:[%s904_s4 + $0x20] sm:$0xff]  ;;  %v192_v6 = vrot.slane %v160_v0, 4  ;;  %v198_v7 = vrot.slane %v161_v1, 4  ;;  %vm426_vm3 = vcmask 1044484  }
  0x3c   : > { %v165_v5 = vld [vmem:[%s904_s4 + $0x28] sm:$0xff]  ;;  %v204_v8 = vrot.slane %v162_v2, 4  ;;  %v166_v9 = vld [vmem:[%s904_s4 + $0x30] sm:$0xff]  ;;  %v167_v10 = vld [vmem:[%s904_s4 + $0x38] sm:$0xff]  ;;  %v210_v11 = vrot.slane %v163_v3, 4  ;;  %v216_v12 = vrot.slane %v164_v4, 4 }
  0x3d   : > { %v222_v13 = vrot.slane %v165_v5, 4  ;;  %v193_v14 = vadd.f32 %v192_v6, %v160_v0  ;;  %v199_v15 = vadd.f32 %v198_v7, %v161_v1  ;;  %v228_v17 = vrot.slane %v166_v9, 4  ;;  %v168_v46 = vld [vmem:[%s904_s4 + $0x40] sm:$0xff]  ;;  %v169_v47 = vld [vmem:[%s904_s4 + $0x48] sm:$0xff]  ;;  %v170_v52 = vld [vmem:[%s904_s4 + $0x50] sm:$0xff]  ;;  %s584_s18 = sshll.u32 %s900_s26, 5 }
  0x3e   : > { %v205_v16 = vadd.f32 %v204_v8, %v162_v2  ;;  %v211_v18 = vadd.f32 %v210_v11, %v163_v3  ;;  %v217_v19 = vadd.f32 %v216_v12, %v164_v4  ;;  %v234_v21 = vrot.slane %v167_v10, 4  ;;  %v171_v53 = vld [vmem:[%s904_s4 + $0x58] sm:$0xff]  ;;  %v172_v58 = vld [vmem:[%s904_s4 + $0x60] sm:$0xff]  ;;  %v173_v61 = vld [vmem:[%s904_s4 + $0x68] sm:$0xff]  ;;  %s934_s27 = scalar_lea.vmem [#allocation6], %s584_s18  ;;  %s591_s30 = sshll.u32 %s762_s9, 9 }
  0x3f   : > { %v223_v20 = vadd.f32 %v222_v13, %v165_v5  ;;  %v194_v22 = vrot.slane %v193_v14, 2  ;;  %v200_v23 = vrot.slane %v199_v15, 2  ;;  %v229_v25 = vadd.f32 %v228_v17, %v166_v9  ;;  %v174_v13 = vld [vmem:[%s904_s4 + $0x70] sm:$0xff]  ;;  %s492_s29 = sshll.u32 %s934_s27, 4  ;;  %s981_s12 = scalar_lea.hbm %s1034_s1, %s591_s30  ;;  %s976_s29 = int_to_ptr.vmem [resolvable:$true] %s492_s29 }
  0x40   : > { %v206_v24 = vrot.slane %v205_v16, 2  ;;  %v212_v26 = vrot.slane %v211_v18, 2  ;;  %v218_v27 = vrot.slane %v217_v19, 2  ;;  %v235_v29 = vadd.f32 %v234_v21, %v167_v10  ;;  %s479_s9 = scalar_lea.sflag [#allocation5], %s900_s26  ;;  %s688_s13 = scalar_lea.vmem %s976_s29, 512 }
  0x41   : > { %v224_v28 = vrot.slane %v223_v20, 2  ;;  %vm428_vm4 = vcmask 1045509   ;;  %v195_v30 = vadd.f32 %v194_v22, %v193_v14  ;;  %v201_v31 = vadd.f32 %v200_v23, %v199_v15  ;;  %p689_p8 = scmp.ne.s32.totalorder %s976_s29, %s688_s13  ;;  %p1042_p9 = scmp.ne.s32.totalorder %s1038_s19, 0 }
  0x42   : > { %v207_v32 = vadd.f32 %v206_v24, %v205_v16  ;;  %v230_v33 = vrot.slane %v229_v25, 2  ;;  %vm430_vm5 = vcmask 1046534   ;;  %v213_v34 = vadd.f32 %v212_v26, %v211_v18  ;;  %v175_v18 = vld [vmem:[%s904_s4 + $0x78] sm:$0xff]  ;;  %s775_s15 = smov [#allocation6]  }
  0x43   : > { %v219_v35 = vadd.f32 %v218_v27, %v217_v19  ;;  %v225_v36 = vadd.f32 %v224_v28, %v223_v20  ;;  %v236_v37 = vrot.slane %v235_v29, 2  ;;  %vm432_vm6 = vcmask 1047559   ;;  %p690_p11 = pnand %p689_p8, %p1042_p9  ;;  %s692_s16 = sshll.u32 %s775_s15, 4  ;;  %s693_s16 = int_to_ptr.vmem [resolvable:$false] %s692_s16 }
  0x44   : > { %v196_v38 = vrot.slane %v195_v30, 1  ;;  %v202_v39 = vrot.slane %v201_v31, 1  ;;  %v208_v40 = vrot.slane %v207_v32, 1  ;;  %v231_v41 = vadd.f32 %v230_v33, %v229_v25  ;;  %s694_s17 = scalar_lea.vmem %s693_s16, 1024  ;;  %p695_p6 = scmp.lt.s32.totalorder %s976_s29, %s693_s16 }
  0x45   : > { %v214_v42 = vrot.slane %v213_v34, 1  ;;  %v220_v43 = vrot.slane %v219_v35, 1  ;;  %v226_v44 = vrot.slane %v225_v36, 1  ;;  %v237_v45 = vadd.f32 %v236_v37, %v235_v29  ;;  %p691_p0 = pneg %p690_p11  ;;  %p696_p13 = scmp.lt.s32.totalorder %s694_s17, %s688_s13 }
  0x46   : > { %v197_v48 = vadd.f32 %v196_v38, %v195_v30  ;;  %v203_v49 = vadd.f32 %v202_v39, %v201_v31  ;;  %v209_v50 = vadd.f32 %v208_v40, %v207_v32  ;;  %v232_v51 = vrot.slane %v231_v41, 1  ;;  %v176_v38 = vld [vmem:[%s904_s4 + $0x80] sm:$0xff] }
  0x47   : > { %v215_v54 = vadd.f32 %v214_v42, %v213_v34  ;;  %v221_v55 = vadd.f32 %v220_v43, %v219_v35  ;;  %v227_v56 = vadd.f32 %v226_v44, %v225_v36  ;;  %v238_v57 = vrot.slane %v237_v45, 1  ;;  %v177_v43 = vld [vmem:[%s904_s4 + $0x88] sm:$0xff]  ;;  %p697_p2 = por %p696_p13, %p695_p6 }
  0x48   : > { %v233_v59 = vadd.f32 %v232_v51, %v231_v41  ;;  %v421_v60 = vsel %vm420_vm0, %v203_v49, %v197_v48  ;;  %v240_v62 = vrot.slane %v168_v46, 4  ;;  %v246_v63 = vrot.slane %v169_v47, 4  ;;  %v178_v48 = vld [vmem:[%s904_s4 + $0x90] sm:$0xff] }
  0x49   : > { %v239_v0 = vadd.f32 %v238_v57, %v237_v45  ;;  %v423_v1 = vsel %vm422_vm1, %v209_v50, %v421_v60  ;;  %v252_v2 = vrot.slane %v170_v52, 4  ;;  %v258_v3 = vrot.slane %v171_v53, 4  ;;  %v180_v60 = vld [vmem:[%s904_s4 + $0xa0] sm:$0xff]  ;;  %p698_p5 = pnand %p697_p2, %p691_p0 }
  0x4a   : > { %v425_v4 = vsel %vm424_vm2, %v215_v54, %v423_v1  ;;  %v241_v5 = vadd.f32 %v240_v62, %v168_v46  ;;  %v247_v6 = vadd.f32 %v246_v63, %v169_v47  ;;  %v264_v7 = vrot.slane %v172_v58, 4  ;;  %v181_v1 = vld [vmem:[%s904_s4 + $0xa8] sm:$0xff] }
  0x4b   : > { %v427_v8 = vsel %vm426_vm3, %v221_v55, %v425_v4  ;;  %v253_v9 = vadd.f32 %v252_v2, %v170_v52  ;;  %v259_v10 = vadd.f32 %v258_v3, %v171_v53  ;;  %v270_v11 = vrot.slane %v173_v61, 4  ;;  %v179_v52 = vld [vmem:[%s904_s4 + $0x98] sm:$0xff] }
  0x4c   : > { %v429_v12 = vsel %vm428_vm4, %v227_v56, %v427_v8  ;;  %v242_v14 = vrot.slane %v241_v5, 2  ;;  %v248_v15 = vrot.slane %v247_v6, 2  ;;  %v265_v16 = vadd.f32 %v264_v7, %v172_v58 }
  0x4d   : > { %v431_v17 = vsel %vm430_vm5, %v233_v59, %v429_v12  ;;  %v254_v19 = vrot.slane %v253_v9, 2  ;;  %v260_v20 = vrot.slane %v259_v10, 2  ;;  %v271_v21 = vadd.f32 %v270_v11, %v173_v61 }
  0x4e   : > { %v433_v22 = vsel %vm432_vm6, %v239_v0, %v431_v17  ;;  %v243_v23 = vadd.f32 %v242_v14, %v241_v5  ;;  %v249_v24 = vadd.f32 %v248_v15, %v247_v6  ;;  %v266_v25 = vrot.slane %v265_v16, 2 }
  0x4f   : > { %474 = vst [vmem:[%s934_s27] sm:$0xff] %v433_v22  ;;  %v255_v26 = vadd.f32 %v254_v19, %v253_v9  ;;  %v261_v27 = vadd.f32 %v260_v20, %v259_v10  ;;  %v272_v28 = vrot.slane %v271_v21, 2  ;;  %v276_v29 = vrot.slane %v174_v13, 4 }
  0x50   : > { %v244_v30 = vrot.slane %v243_v23, 1  ;;  %v250_v31 = vrot.slane %v249_v24, 1  ;;  %v267_v32 = vadd.f32 %v266_v25, %v265_v16  ;;  %v282_v33 = vrot.slane %v175_v18, 4 }
  0x51   : > { %v256_v34 = vrot.slane %v255_v26, 1  ;;  %v262_v35 = vrot.slane %v261_v27, 1  ;;  %v273_v36 = vadd.f32 %v272_v28, %v271_v21  ;;  %v277_v37 = vadd.f32 %v276_v29, %v174_v13  ;;  %v182_v13 = vld [vmem:[%s904_s4 + $0xb0] sm:$0xff] }
  0x52   : > { %v245_v39 = vadd.f32 %v244_v30, %v243_v23  ;;  %v251_v40 = vadd.f32 %v250_v31, %v249_v24  ;;  %v268_v41 = vrot.slane %v267_v32, 1  ;;  %v283_v42 = vadd.f32 %v282_v33, %v175_v18  ;;  %v183_v18 = vld [vmem:[%s904_s4 + $0xb8] sm:$0xff]  ;;  %v184_v30 = vld [vmem:[%s904_s4 + $0xc0] sm:$0xff] }
  0x53   : > { %v257_v44 = vadd.f32 %v256_v34, %v255_v26  ;;  %v263_v45 = vadd.f32 %v262_v35, %v261_v27  ;;  %v274_v46 = vrot.slane %v273_v36, 1  ;;  %v278_v47 = vrot.slane %v277_v37, 2 }
  0x54   : > { %v269_v49 = vadd.f32 %v268_v41, %v267_v32  ;;  %v284_v50 = vrot.slane %v283_v42, 2  ;;  %v434_v51 = vsel %vm420_vm0, %v251_v40, %v245_v39  ;;  %v288_v53 = vrot.slane %v176_v38, 4 }
  0x55   : > { %v275_v54 = vadd.f32 %v274_v46, %v273_v36  ;;  %v279_v55 = vadd.f32 %v278_v47, %v277_v37  ;;  %v435_v56 = vsel %vm422_vm1, %v257_v44, %v434_v51  ;;  %v294_v57 = vrot.slane %v177_v43, 4 }
  0x56   : > { %v285_v58 = vadd.f32 %v284_v50, %v283_v42  ;;  %v436_v59 = vsel %vm424_vm2, %v263_v45, %v435_v56  ;;  %v289_v61 = vadd.f32 %v288_v53, %v176_v38  ;;  %v300_v62 = vrot.slane %v178_v48, 4  ;;  %v185_v42 = vld [vmem:[%s904_s4 + $0xc8] sm:$0xff] }
  0x57   : > { %v280_v63 = vrot.slane %v279_v55, 1  ;;  %v437_v0 = vsel %vm426_vm3, %v269_v49, %v436_v59  ;;  %v295_v2 = vadd.f32 %v294_v57, %v177_v43  ;;  %v306_v3 = vrot.slane %v179_v52, 4 }
  0x58   : > { %v286_v4 = vrot.slane %v285_v58, 1  ;;  %v438_v5 = vsel %vm428_vm4, %v275_v54, %v437_v0  ;;  %v290_v6 = vrot.slane %v289_v61, 2  ;;  %v301_v7 = vadd.f32 %v300_v62, %v178_v48  ;;  %v186_v48 = vld [vmem:[%s904_s4 + $0xd0] sm:$0xff] }
  0x59   : > { %v281_v8 = vadd.f32 %v280_v63, %v279_v55  ;;  %v296_v9 = vrot.slane %v295_v2, 2  ;;  %v307_v10 = vadd.f32 %v306_v3, %v179_v52  ;;  %v312_v11 = vrot.slane %v180_v60, 4  ;;  %v187_v52 = vld [vmem:[%s904_s4 + $0xd8] sm:$0xff] }
  0x5a   : > { %v287_v12 = vadd.f32 %v286_v4, %v285_v58  ;;  %v291_v14 = vadd.f32 %v290_v6, %v289_v61  ;;  %v302_v15 = vrot.slane %v301_v7, 2  ;;  %v318_v16 = vrot.slane %v181_v1, 4 }
  0x5b   : > { %v439_v17 = vsel %vm430_vm5, %v281_v8, %v438_v5  ;;  %v297_v19 = vadd.f32 %v296_v9, %v295_v2  ;;  %v308_v20 = vrot.slane %v307_v10, 2  ;;  %v313_v21 = vadd.f32 %v312_v11, %v180_v60  ;;  %v188_v60 = vld [vmem:[%s904_s4 + $0xe0] sm:$0xff] }
  0x5c   : > { %v440_v22 = vsel %vm432_vm6, %v287_v12, %v439_v17  ;;  %v292_v23 = vrot.slane %v291_v14, 1  ;;  %v303_v24 = vadd.f32 %v302_v15, %v301_v7  ;;  %v319_v25 = vadd.f32 %v318_v16, %v181_v1  ;;  %v189_v1 = vld [vmem:[%s904_s4 + $0xe8] sm:$0xff] }
  0x5d   : > { %475 = vst [vmem:[%s934_s27 + $0x8] sm:$0xff] %v440_v22  ;;  %v298_v26 = vrot.slane %v297_v19, 1  ;;  %v309_v27 = vadd.f32 %v308_v20, %v307_v10  ;;  %v314_v28 = vrot.slane %v313_v21, 2  ;;  %v324_v29 = vrot.slane %v182_v13, 4 }
  0x5e   : > { %v293_v31 = vadd.f32 %v292_v23, %v291_v14  ;;  %v304_v32 = vrot.slane %v303_v24, 1  ;;  %v320_v33 = vrot.slane %v319_v25, 2  ;;  %v330_v34 = vrot.slane %v183_v18, 4 }
  0x5f   : > { %v299_v35 = vadd.f32 %v298_v26, %v297_v19  ;;  %v310_v36 = vrot.slane %v309_v27, 1  ;;  %v315_v37 = vadd.f32 %v314_v28, %v313_v21  ;;  %v325_v38 = vadd.f32 %v324_v29, %v182_v13  ;;  %v190_v13 = vld [vmem:[%s904_s4 + $0xf0] sm:$0xff] }
  0x60   : > { %v305_v39 = vadd.f32 %v304_v32, %v303_v24  ;;  %v321_v40 = vadd.f32 %v320_v33, %v319_v25  ;;  %v331_v41 = vadd.f32 %v330_v34, %v183_v18  ;;  %v336_v43 = vrot.slane %v184_v30, 4  ;;  %v191_v18 = vld [vmem:[%s904_s4 + $0xf8] sm:$0xff] }
  0x61   : > { %v311_v44 = vadd.f32 %v310_v36, %v309_v27  ;;  %v316_v45 = vrot.slane %v315_v37, 1  ;;  %v326_v46 = vrot.slane %v325_v38, 2  ;;  %v441_v47 = vsel %vm420_vm0, %v299_v35, %v293_v31 }
  0x62   : > { %v322_v49 = vrot.slane %v321_v40, 1  ;;  %v332_v50 = vrot.slane %v331_v41, 2  ;;  %v442_v51 = vsel %vm422_vm1, %v305_v39, %v441_v47  ;;  %v337_v53 = vadd.f32 %v336_v43, %v184_v30 }
  0x63   : > { %v317_v54 = vadd.f32 %v316_v45, %v315_v37  ;;  %v327_v55 = vadd.f32 %v326_v46, %v325_v38  ;;  %v443_v56 = vsel %vm424_vm2, %v311_v44, %v442_v51  ;;  %v342_v57 = vrot.slane %v185_v42, 4 }
  0x64   : > { %v323_v58 = vadd.f32 %v322_v49, %v321_v40  ;;  %v333_v59 = vadd.f32 %v332_v50, %v331_v41  ;;  %v338_v61 = vrot.slane %v337_v53, 2  ;;  %v348_v62 = vrot.slane %v186_v48, 4 }
  0x65   : > { %v328_v63 = vrot.slane %v327_v55, 1  ;;  %v444_v0 = vsel %vm426_vm3, %v317_v54, %v443_v56  ;;  %v343_v2 = vadd.f32 %v342_v57, %v185_v42  ;;  %v354_v3 = vrot.slane %v187_v52, 4 }
  0x66   : > { %v334_v4 = vrot.slane %v333_v59, 1  ;;  %v445_v5 = vsel %vm428_vm4, %v323_v58, %v444_v0  ;;  %v339_v6 = vadd.f32 %v338_v61, %v337_v53  ;;  %v349_v7 = vadd.f32 %v348_v62, %v186_v48 }
  0x67   : > { %v329_v8 = vadd.f32 %v328_v63, %v327_v55  ;;  %v344_v9 = vrot.slane %v343_v2, 2  ;;  %v355_v10 = vadd.f32 %v354_v3, %v187_v52  ;;  %v360_v11 = vrot.slane %v188_v60, 4 }
  0x68   : > { %v335_v12 = vadd.f32 %v334_v4, %v333_v59  ;;  %v340_v14 = vrot.slane %v339_v6, 1  ;;  %v350_v15 = vrot.slane %v349_v7, 2  ;;  %v366_v16 = vrot.slane %v189_v1, 4 }
  0x69   : > { %v446_v17 = vsel %vm430_vm5, %v329_v8, %v445_v5  ;;  %v345_v19 = vadd.f32 %v344_v9, %v343_v2  ;;  %v356_v20 = vrot.slane %v355_v10, 2  ;;  %v361_v21 = vadd.f32 %v360_v11, %v188_v60 }
  0x6a   : > { %v447_v22 = vsel %vm432_vm6, %v335_v12, %v446_v17  ;;  %v341_v23 = vadd.f32 %v340_v14, %v339_v6  ;;  %v351_v24 = vadd.f32 %v350_v15, %v349_v7  ;;  %v367_v25 = vadd.f32 %v366_v16, %v189_v1 }
  0x6b   : > { %476 = vst [vmem:[%s934_s27 + $0x10] sm:$0xff] %v447_v22  ;;  %v346_v26 = vrot.slane %v345_v19, 1  ;;  %v357_v27 = vadd.f32 %v356_v20, %v355_v10  ;;  %v362_v28 = vrot.slane %v361_v21, 2  ;;  %v372_v29 = vrot.slane %v190_v13, 4 }
  0x6c   : > { %v352_v30 = vrot.slane %v351_v24, 1  ;;  %v368_v31 = vrot.slane %v367_v25, 2  ;;  %v378_v32 = vrot.slane %v191_v18, 4 }
  0x6d   : > { %v347_v33 = vadd.f32 %v346_v26, %v345_v19  ;;  %v358_v34 = vrot.slane %v357_v27, 1  ;;  %v363_v35 = vadd.f32 %v362_v28, %v361_v21  ;;  %v373_v36 = vadd.f32 %v372_v29, %v190_v13 }
  0x6e   : > { %v353_v37 = vadd.f32 %v352_v30, %v351_v24  ;;  %v369_v38 = vadd.f32 %v368_v31, %v367_v25  ;;  %v379_v39 = vadd.f32 %v378_v32, %v191_v18 }
  0x6f   : > { %v359_v40 = vadd.f32 %v358_v34, %v357_v27  ;;  %v364_v41 = vrot.slane %v363_v35, 1  ;;  %v374_v42 = vrot.slane %v373_v36, 2  ;;  %v448_v43 = vsel %vm420_vm0, %v347_v33, %v341_v23 }
  0x70   : > { %v370_v44 = vrot.slane %v369_v38, 1  ;;  %v380_v45 = vrot.slane %v379_v39, 2  ;;  %v449_v46 = vsel %vm422_vm1, %v353_v37, %v448_v43 }
  0x71   : > { %v365_v47 = vadd.f32 %v364_v41, %v363_v35  ;;  %v375_v48 = vadd.f32 %v374_v42, %v373_v36  ;;  %v450_v49 = vsel %vm424_vm2, %v359_v40, %v449_v46 }
  0x72   : > { %v371_v50 = vadd.f32 %v370_v44, %v369_v38  ;;  %v381_v51 = vadd.f32 %v380_v45, %v379_v39 }
  0x73   : > { %v376_v52 = vrot.slane %v375_v48, 1  ;;  %v451_v53 = vsel %vm426_vm3, %v365_v47, %v450_v49 }
  0x74   : > { %v382_v54 = vrot.slane %v381_v51, 1  ;;  %v452_v55 = vsel %vm428_vm4, %v371_v50, %v451_v53 }
  0x75   : > { %v377_v56 = vadd.f32 %v376_v52, %v375_v48 }
  0x76   : > { %v383_v57 = vadd.f32 %v382_v54, %v381_v51 }
  0x77   : > { %v453_v58 = vsel %vm430_vm5, %v377_v56, %v452_v55 }
  0x78   : > { %v454_v59 = vsel %vm432_vm6, %v383_v57, %v453_v58 }
  0x79   : > { %477 = vst [vmem:[%s934_s27 + $0x18] sm:$0xff] %v454_v59 }
  0x7a   : > { %701 = shalt.err (!%p698_p5)
}
  0x7b   : > { %s702_s22 = scalar_lea.hbm %s981_s12, 512  ;;  %s706_s25 = scalar_lea.hbm %s1034_s1, 1024 }
  0x7c   : > { %p703_p4 = scmp.ne.s32.totalorder %s981_s12, %s702_s22  ;;  %p707_p12 = scmp.lt.u32.totalorder %s981_s12, %s1034_s1 }
  0x7d   : > { %p708_p1 = scmp.lt.u32.totalorder %s706_s25, %s702_s22  ;;  %p710_p8 = scmp.lt.u32.totalorder %s702_s22, %s981_s12 }
  0x7e   : > { %p704_p7 = pnand %p703_p4, %p1042_p9 }
  0x7f   : > { %p709_p3 = por %p708_p1, %p707_p12 }
  0x80   : > { %p705_p10 = pneg %p704_p7 }
  0x81   : > { %p711_p11 = por %p710_p8, %p709_p3 }
  0x83   : > { %p712_p0 = pnand %p711_p11, %p705_p10 }
  0x85   : > { %715 = shalt.err (!%p712_p0)
}
  0x86   : > { %s776_s4 = smov 128   ;;  %s777_s18 = smov 8  }
  0x87   : > { %594 = dma.vmem_to_hbm [thread:$0]  (%p1042_p9), %s976_s29, 512, %s981_s12, %s479_s9, %s776_s4, %s776_s4, %s777_s18  }
  0x88 PF: > { %s507_s27 = sand.u32 1, %s750_s6   ;;  %p1043_p6 = scmp.ne.s32.totalorder %s1039_s21, 0 }
  0x89   : > { %p1044_p13 = scmp.ge.s32.totalorder %s770_s11, 2  ;;  %s508_s30 = scalar_lea.sflag [#allocation5], %s507_s27 }
  0x8b   : > { %p601_p2 = pnand %p1044_p13, %p1043_p6 }
  0x8d   : > { %745 = dma.done.wait (!%p601_p2), %s508_s30, 512  }
  0x8e   : > { %747 = vsyncadd (!%p601_p2), %s508_s30, 4294966784  ;;  %s17_s11 = sadd.s32 1, %s770_s11   ;;  %s1045_s6 = smov %s754_s7 }
  0x8f   : > { %p14_p5 = scmp.ge.s32.totalorder %s17_s11, 4   ;;  %s1046_s7 = smov %s758_s8 }
  0x90   : > { %s1047_s8 = smov %s844_s20  ;;  %s1048_s9 = smov %s766_s10 }
  0x91   : > { %s1049_s10 = smov %s1051_s14  ;;  %16 = sbr.rel (!%p14_p5) target bundleno = 6 (0x6), region = 77 }
  0x98   :  { %513 = vsyncpa [#allocation4], 1 }
  0x99   :  { %515 = vsyncpa [#allocation4 + $0x1], 1 }
  0x9a   :  { %516 = vsyncpa [#allocation5], 1 }
  0x9b   :  { %518 = vsyncpa [#allocation5 + $0x1], 1 }

</bundles_post_ra>
